<compile_context>
chip_gen: v5e
topology: v5e:2x2
jax: 0.10.0
libtpu: 0.0.40
codegen_flags: <defaults>
</compile_context>

<pallas_src>
import jax
import jax.numpy as jnp
from jax.experimental import pallas as pl
from jax.experimental.pallas import tpu as pltpu


def patch_embed_kernel(x_ref, w_ref, b_ref, o_ref):
    # x_ref: (TM, K)  rows = flattened (batch, patch) index, K = C_in*kh*kw
    # w_ref: (K, E)   pre-transposed conv weight
    # b_ref: (1, E)
    # o_ref: (TM, E)
    acc = jnp.dot(x_ref[...], w_ref[...], preferred_element_type=jnp.float32)
    o_ref[...] = (acc + b_ref[...]).astype(o_ref.dtype)


def _round_up(a, m):
    return (a + m - 1) // m * m


def patch_embedding(x, weight, bias, patch_size):
    """x: (B, C, H, W); weight: (E, C, kh, kw) (PyTorch layout); bias: (E,).

    Returns (B, num_patches, E), matching Conv2d(stride=kernel) + flatten + transpose.
    """
    B, C, H, W = x.shape
    kh, kw = patch_size
    E = weight.shape[0]
    Hp, Wp = H // kh, W // kw
    n_patches = Hp * Wp
    K = C * kh * kw
    M = B * n_patches

    # ---- layout plumbing (wrapper-side, not compute) ------------------------
    # (B, C, Hp, kh, Wp, kw) -> (B, Hp, Wp, C, kh, kw) -> (M, K)
    patches = x.reshape(B, C, Hp, kh, Wp, kw).transpose(0, 2, 4, 1, 3, 5)
    patches = patches.reshape(M, K)
    w_t = weight.reshape(E, K).T          # (K, E): kernel computes x @ W + b
    b2 = bias.reshape(1, E)

    # ---- row tiling: fold batch+patch into one axis, tile in >=8-row blocks --
    TM = min(256, _round_up(M, 8))
    Mp = _round_up(M, TM)
    if Mp != M:
        patches = jnp.pad(patches, ((0, Mp - M), (0, 0)))

    out = pl.pallas_call(
        patch_embed_kernel,
        out_shape=jax.ShapeDtypeStruct((Mp, E), x.dtype),
        grid_spec=pltpu.PrefetchScalarGridSpec(
            num_scalar_prefetch=0,
            grid=(Mp // TM,),
            in_specs=[
                pl.BlockSpec((TM, K), lambda i: (i, 0)),   # patch rows
                pl.BlockSpec((K, E), lambda i: (0, 0)),    # weight (resident)
                pl.BlockSpec((1, E), lambda i: (0, 0)),    # bias   (resident)
            ],
            out_specs=pl.BlockSpec((TM, E), lambda i: (i, 0)),
        ),
        compiler_params=pltpu.CompilerParams(
            dimension_semantics=("parallel",)),
    )(patches, w_t, b2)

    return out[:M].reshape(B, n_patches, E)


def _reference(x, weight, bias, patch_size):
    """Pure-JAX reference matching the PyTorch Conv2d + flatten + transpose."""
    y = jax.lax.conv_general_dilated(
        x, weight,
        window_strides=patch_size,
        padding="VALID",
        dimension_numbers=("NCHW", "OIHW", "NCHW"),
    ) + bias.reshape(1, -1, 1, 1)
    B, E = y.shape[0], y.shape[1]
    return y.reshape(B, E, -1).transpose(0, 2, 1)   # (B, num_patches, E)


if __name__ == "__main__":
    # Small shapes consistent with the module; patch_size=(16, 8) per the source.
    B, C_in = 2, 4
    H, W = 64, 32
    patch_size = (16, 8)
    embed_dim = 128          # multiple of 128 -> lane-dense kernel output

    key = jax.random.PRNGKey(0)
    kx, kw, kb = jax.random.split(key, 3)

    x = jax.random.normal(kx, (B, C_in, H, W), dtype=jnp.float32)
    weight = (0.02 * jax.random.normal(
        kw, (embed_dim, C_in, patch_size[0], patch_size[1]))).astype(jnp.float32)
    bias = (0.02 * jax.random.normal(kb, (embed_dim,))).astype(jnp.float32)

    out = patch_embedding(x, weight, bias, patch_size)
    out = jax.block_until_ready(out)

    n_patches = (H // patch_size[0]) * (W // patch_size[1])
    assert out.shape == (B, n_patches, embed_dim), out.shape

    ref = _reference(x, weight, bias, patch_size)
    assert jnp.allclose(out, ref, atol=1e-4, rtol=1e-4), "mismatch vs reference"

    print("KERNEL_OK")
</pallas_src>

<mosaic_0001>
module attributes {stable_mosaic.version = 11 : i64} {
  func.func @patch_embed_kernel(%arg0: i32, %arg1: memref<32x512xf32, #tpu.memory_space<vmem>>, %arg2: memref<512x128xf32, #tpu.memory_space<vmem>>, %arg3: memref<1x128xf32, #tpu.memory_space<vmem>>, %arg4: memref<32x128xf32, #tpu.memory_space<vmem>>) attributes {dimension_semantics = [#tpu.dimension_semantics<parallel>], iteration_bounds = array<i64: 1>, scalar_prefetch = 0 : i64, scratch_operands = 0 : i64, tpu.core_type = #tpu.core_type<tc>, window_params = [{transform_indices = @transform_0, window_bounds = array<i64: 32, 512>}, {pipeline_mode = #tpu.pipeline_mode<synchronous>, transform_indices = @transform_1, window_bounds = array<i64: 512, 128>}, {pipeline_mode = #tpu.pipeline_mode<synchronous>, transform_indices = @transform_2, window_bounds = array<i64: 1, 128>}, {transform_indices = @transform_3, window_bounds = array<i64: 32, 128>}]} {
    %c0 = arith.constant 0 : index
    %c0_0 = arith.constant 0 : index
    %0 = vector.load %arg1[%c0, %c0_0] : memref<32x512xf32, #tpu.memory_space<vmem>>, vector<32x512xf32>
    %c0_1 = arith.constant 0 : index
    %c0_2 = arith.constant 0 : index
    %1 = vector.load %arg2[%c0_1, %c0_2] : memref<512x128xf32, #tpu.memory_space<vmem>>, vector<512x128xf32>
    %cst = arith.constant dense<0.000000e+00> : vector<32x128xf32>
    %2 = tpu.matmul %0, %1, %cst {dimension_numbers = #tpu.dot_dimension_numbers<[1], [0], [0], [1], [0, 0, 1, 1], [], []>} : vector<32x512xf32>, vector<512x128xf32>, vector<32x128xf32> -> vector<32x128xf32>
    %c0_3 = arith.constant 0 : index
    %c0_4 = arith.constant 0 : index
    %3 = vector.load %arg3[%c0_3, %c0_4] : memref<1x128xf32, #tpu.memory_space<vmem>>, vector<1x128xf32>
    %4 = vector.broadcast %3 : vector<1x128xf32> to vector<32x128xf32>
    %5 = arith.addf %2, %4 : vector<32x128xf32>
    %c0_5 = arith.constant 0 : index
    %c0_6 = arith.constant 0 : index
    %6 = vector.load %arg4[%c0_5, %c0_6] : memref<32x128xf32, #tpu.memory_space<vmem>>, vector<32x128xf32>
    tpu.vector_store %arg4[%c0_5, %c0_6], %5 {strides = array<i32>} : memref<32x128xf32, #tpu.memory_space<vmem>>, vector<32x128xf32>,
    return
  }
  func.func @transform_0(%arg0: i32) -> (i32, i32) {
    %c0_i32 = arith.constant 0 : i32
    %c0_i32_0 = arith.constant 0 : i32
    return %arg0, %c0_i32 : i32, i32
  }
  func.func @transform_1(%arg0: i32) -> (i32, i32) {
    %c0_i32 = arith.constant 0 : i32
    %c0_i32_0 = arith.constant 0 : i32
    %c0_i32_1 = arith.constant 0 : i32
    return %c0_i32, %c0_i32_0 : i32, i32
  }
  func.func @transform_2(%arg0: i32) -> (i32, i32) {
    %c0_i32 = arith.constant 0 : i32
    %c0_i32_0 = arith.constant 0 : i32
    %c0_i32_1 = arith.constant 0 : i32
    return %c0_i32, %c0_i32_0 : i32, i32
  }
  func.func @transform_3(%arg0: i32) -> (i32, i32) {
    %c0_i32 = arith.constant 0 : i32
    %c0_i32_0 = arith.constant 0 : i32
    return %arg0, %c0_i32 : i32, i32
  }
}

</mosaic_0001>

<bundles_post_ra>
// kernel: tpu_custom_call.1
= control target key start
LH: loop header
LB: loop body
LE: loop exit
PB: predicated region body
PF: predicated region fallthrough
CT: control target
= control target key end

     0   :  { %8 = vsyncpa [#allocation3], 0  ;;  %s402_s0 = inlined_call_operand.hbm [shape: f32[32,512], index: 0, kind: input, shape index: {}]   ;;  %s403_s1 = inlined_call_operand.hbm [shape: f32[512,128], index: 1, kind: input, shape index: {}]   ;;  %s404_s2 = inlined_call_operand.vmem [shape: f32[1,128], index: 2, kind: input, shape index: {}]   ;;  %s405_s3 = inlined_call_operand.hbm [shape: f32[32,128], index: 3, kind: output, shape index: {}]  }
   0x1   :  { %9 = vsyncpa [#allocation6], 0 }
   0x2   :  { %10 = vsyncpa [#allocation4], 0  ;;  %s15_s14 = sshll.u32 %s402_s0, 4  ;;  %s357_s15 = smov [#allocation2]   ;;  %s16_s14 = int_to_ptr.hbm [resolvable:$true] %s15_s14 }
   0x3   :  { %s17_s16 = sshll.u32 %s357_s15, 4  ;;  %s28_s19 = sshll.u32 %s403_s1, 4  ;;  %s18_s16 = int_to_ptr.vmem [resolvable:$true] %s17_s16  ;;  %s29_s19 = int_to_ptr.hbm [resolvable:$true] %s28_s19 }
   0x4   :  { %s358_s20 = smov 512   ;;  %s359_s21 = smov 32  }
   0x5   :  { %23 = dma.hbm_to_vmem [thread:$0]  %s16_s14, 2048, %s18_s16, [#allocation3], %s358_s20, %s358_s20, %s359_s21  }
   0x6   :  { %s360_s22 = smov [#allocation5]   ;;  %s361_s24 = smov 128  }
   0x7   :  { %s30_s23 = sshll.u32 %s360_s22, 4  ;;  %s362_s25 = smov 8   ;;  %s31_s23 = int_to_ptr.vmem [resolvable:$true] %s30_s23 }
   0x8   :  { %36 = dma.hbm_to_vmem [thread:$0]  %s29_s19, 8192, %s31_s23, [#allocation6], %s361_s24, %s361_s24, %s362_s25  }
   0x9   :  { %351 = dma.done.wait [#allocation3], 2048  }
   0xa   :  { %352 = vsyncadd [#allocation3], 4294965248 }
   0xb   :  { %353 = dma.done.wait [#allocation6], 8192  }
   0xc   :  { %354 = vsyncadd [#allocation6], 4294959104  ;;  %v110_v0 = vld [vmem:[#allocation5 + $0x178] sm:$0xff]  ;;  %v109_v2 = vld [vmem:[#allocation5 + $0x170] sm:$0xff]  ;;  %s257_s29 = sshll.u32 %s405_s3, 4  ;;  %s258_s29 = int_to_ptr.hbm [resolvable:$true] %s257_s29 }
   0xd   :  { %v78_v1 = vld [vmem:[#allocation5 + $0x78] sm:$0xff]  ;;  %189 = vmatpush.msra.mxu2 %v110_v0  ;;  %v77_v4 = vld [vmem:[#allocation5 + $0x70] sm:$0xff]  ;;  %v108_v6 = vld [vmem:[#allocation5 + $0x168] sm:$0xff] }
   0xe   :  { %131 = vmatpush.msra.mxu0 %v78_v1  ;;  %v126_v3 = vld [vmem:[#allocation5 + $0x1f8] sm:$0xff]  ;;  %v125_v7 = vld [vmem:[#allocation5 + $0x1f0] sm:$0xff]  ;;  %v76_v8 = vld [vmem:[#allocation5 + $0x68] sm:$0xff] }
   0xf   :  { %v94_v5 = vld [vmem:[#allocation5 + $0xf8] sm:$0xff]  ;;  %218 = vmatpush.msra.mxu3 %v126_v3  ;;  %190 = vmatpush.msra.mxu2 %v109_v2  ;;  %v93_v9 = vld [vmem:[#allocation5 + $0xf0] sm:$0xff]  ;;  %v124_v10 = vld [vmem:[#allocation5 + $0x1e8] sm:$0xff] }
  0x10   :  { %160 = vmatpush.msra.mxu1 %v94_v5  ;;  %132 = vmatpush.msra.mxu0 %v77_v4  ;;  %v107_v11 = vld [vmem:[#allocation5 + $0x160] sm:$0xff]  ;;  %v92_v13 = vld [vmem:[#allocation5 + $0xe8] sm:$0xff]  ;;  %v106_v16 = vld [vmem:[#allocation5 + $0x158] sm:$0xff] }
  0x11   :  { %219 = vmatpush.msra.mxu3 %v125_v7  ;;  %v75_v12 = vld [vmem:[#allocation5 + $0x60] sm:$0xff]  ;;  %191 = vmatpush.msra.mxu2 %v108_v6  ;;  %v74_v17 = vld [vmem:[#allocation5 + $0x58] sm:$0xff]  ;;  %v105_v20 = vld [vmem:[#allocation5 + $0x150] sm:$0xff] }
  0x12   :  { %161 = vmatpush.msra.mxu1 %v93_v9  ;;  %133 = vmatpush.msra.mxu0 %v76_v8  ;;  %v123_v14 = vld [vmem:[#allocation5 + $0x1e0] sm:$0xff]  ;;  %v122_v18 = vld [vmem:[#allocation5 + $0x1d8] sm:$0xff]  ;;  %v73_v21 = vld [vmem:[#allocation5 + $0x50] sm:$0xff] }
  0x13   :  { %v91_v15 = vld [vmem:[#allocation5 + $0xe0] sm:$0xff]  ;;  %220 = vmatpush.msra.mxu3 %v124_v10  ;;  %192 = vmatpush.msra.mxu2 %v107_v11  ;;  %v90_v19 = vld [vmem:[#allocation5 + $0xd8] sm:$0xff]  ;;  %v121_v22 = vld [vmem:[#allocation5 + $0x1d0] sm:$0xff] }
  0x14   :  { %162 = vmatpush.msra.mxu1 %v92_v13  ;;  %134 = vmatpush.msra.mxu0 %v75_v12  ;;  %v89_v23 = vld [vmem:[#allocation5 + $0xd0] sm:$0xff]  ;;  %v104_v24 = vld [vmem:[#allocation5 + $0x148] sm:$0xff]  ;;  %v103_v28 = vld [vmem:[#allocation5 + $0x140] sm:$0xff] }
  0x15   :  { %221 = vmatpush.msra.mxu3 %v123_v14  ;;  %193 = vmatpush.msra.mxu2 %v106_v16  ;;  %v72_v25 = vld [vmem:[#allocation5 + $0x48] sm:$0xff]  ;;  %v71_v29 = vld [vmem:[#allocation5 + $0x40] sm:$0xff]  ;;  %v102_v32 = vld [vmem:[#allocation5 + $0x138] sm:$0xff] }
  0x16   :  { %163 = vmatpush.msra.mxu1 %v91_v15  ;;  %135 = vmatpush.msra.mxu0 %v74_v17  ;;  %v120_v26 = vld [vmem:[#allocation5 + $0x1c8] sm:$0xff]  ;;  %v119_v30 = vld [vmem:[#allocation5 + $0x1c0] sm:$0xff]  ;;  %v70_v33 = vld [vmem:[#allocation5 + $0x38] sm:$0xff] }
  0x17   :  { %222 = vmatpush.msra.mxu3 %v122_v18  ;;  %194 = vmatpush.msra.mxu2 %v105_v20  ;;  %v88_v27 = vld [vmem:[#allocation5 + $0xc8] sm:$0xff]  ;;  %v87_v31 = vld [vmem:[#allocation5 + $0xc0] sm:$0xff]  ;;  %v118_v34 = vld [vmem:[#allocation5 + $0x1b8] sm:$0xff] }
  0x18   :  { %164 = vmatpush.msra.mxu1 %v90_v19  ;;  %136 = vmatpush.msra.mxu0 %v73_v21  ;;  %v86_v35 = vld [vmem:[#allocation5 + $0xb8] sm:$0xff]  ;;  %v101_v36 = vld [vmem:[#allocation5 + $0x130] sm:$0xff]  ;;  %v100_v40 = vld [vmem:[#allocation5 + $0x128] sm:$0xff] }
  0x19   :  { %223 = vmatpush.msra.mxu3 %v121_v22  ;;  %195 = vmatpush.msra.mxu2 %v104_v24  ;;  %v69_v37 = vld [vmem:[#allocation5 + $0x30] sm:$0xff]  ;;  %v68_v41 = vld [vmem:[#allocation5 + $0x28] sm:$0xff]  ;;  %v99_v44 = vld [vmem:[#allocation5 + $0x120] sm:$0xff] }
  0x1a   :  { %165 = vmatpush.msra.mxu1 %v89_v23  ;;  %137 = vmatpush.msra.mxu0 %v72_v25  ;;  %v117_v38 = vld [vmem:[#allocation5 + $0x1b0] sm:$0xff]  ;;  %v116_v42 = vld [vmem:[#allocation5 + $0x1a8] sm:$0xff]  ;;  %v67_v45 = vld [vmem:[#allocation5 + $0x20] sm:$0xff] }
  0x1b   :  { %224 = vmatpush.msra.mxu3 %v120_v26  ;;  %196 = vmatpush.msra.mxu2 %v103_v28  ;;  %v85_v39 = vld [vmem:[#allocation5 + $0xb0] sm:$0xff]  ;;  %v84_v43 = vld [vmem:[#allocation5 + $0xa8] sm:$0xff]  ;;  %v115_v46 = vld [vmem:[#allocation5 + $0x1a0] sm:$0xff] }
  0x1c   :  { %166 = vmatpush.msra.mxu1 %v88_v27  ;;  %138 = vmatpush.msra.mxu0 %v71_v29  ;;  %v83_v47 = vld [vmem:[#allocation5 + $0xa0] sm:$0xff]  ;;  %v98_v48 = vld [vmem:[#allocation5 + $0x118] sm:$0xff]  ;;  %v97_v52 = vld [vmem:[#allocation5 + $0x110] sm:$0xff] }
  0x1d   :  { %225 = vmatpush.msra.mxu3 %v119_v30  ;;  %197 = vmatpush.msra.mxu2 %v102_v32  ;;  %v66_v49 = vld [vmem:[#allocation5 + $0x18] sm:$0xff]  ;;  %v65_v53 = vld [vmem:[#allocation5 + $0x10] sm:$0xff]  ;;  %v96_v56 = vld [vmem:[#allocation5 + $0x108] sm:$0xff] }
  0x1e   :  { %167 = vmatpush.msra.mxu1 %v87_v31  ;;  %139 = vmatpush.msra.mxu0 %v70_v33  ;;  %v114_v50 = vld [vmem:[#allocation5 + $0x198] sm:$0xff]  ;;  %v113_v54 = vld [vmem:[#allocation5 + $0x190] sm:$0xff]  ;;  %v64_v57 = vld [vmem:[#allocation5 + $0x8] sm:$0xff] }
  0x1f   :  { %226 = vmatpush.msra.mxu3 %v118_v34  ;;  %198 = vmatpush.msra.mxu2 %v101_v36  ;;  %v82_v51 = vld [vmem:[#allocation5 + $0x98] sm:$0xff]  ;;  %v81_v55 = vld [vmem:[#allocation5 + $0x90] sm:$0xff]  ;;  %v112_v58 = vld [vmem:[#allocation5 + $0x188] sm:$0xff] }
  0x20   :  { %168 = vmatpush.msra.mxu1 %v86_v35  ;;  %140 = vmatpush.msra.mxu0 %v69_v37  ;;  %v80_v59 = vld [vmem:[#allocation5 + $0x88] sm:$0xff]  ;;  %v95_v60 = vld [vmem:[#allocation5 + $0x100] sm:$0xff]  ;;  %v49_v62 = vld [vmem:[#allocation2 + $0x10] sm:$0xff] }
  0x21   :  { %227 = vmatpush.msra.mxu3 %v117_v38  ;;  %199 = vmatpush.msra.mxu2 %v100_v40  ;;  %v63_v61 = vld [vmem:[#allocation5] sm:$0xff]  ;;  %v50_v1 = vld [vmem:[#allocation2 + $0x18] sm:$0xff]  ;;  %v48_v3 = vld [vmem:[#allocation2 + $0x8] sm:$0xff] }
  0x22   :  { %169 = vmatpush.msra.mxu1 %v85_v39  ;;  %141 = vmatpush.msra.mxu0 %v68_v41  ;;  %v111_v63 = vld [vmem:[#allocation5 + $0x180] sm:$0xff]  ;;  %v53_v4 = vld [vmem:[#allocation2 + $0x30] sm:$0xff]  ;;  %v54_v6 = vld [vmem:[#allocation2 + $0x38] sm:$0xff] }
  0x23   :  { %228 = vmatpush.msra.mxu3 %v116_v42  ;;  %200 = vmatpush.msra.mxu2 %v99_v44  ;;  %v47_v0 = vld [vmem:[#allocation2] sm:$0xff]  ;;  %v52_v7 = vld [vmem:[#allocation2 + $0x28] sm:$0xff]  ;;  %v57_v8 = vld [vmem:[#allocation2 + $0x50] sm:$0xff] }
  0x24   :  { %170 = vmatpush.msra.mxu1 %v84_v43  ;;  %142 = vmatpush.msra.mxu0 %v67_v45  ;;  %v79_v2 = vld [vmem:[#allocation5 + $0x80] sm:$0xff]  ;;  %v58_v10 = vld [vmem:[#allocation2 + $0x58] sm:$0xff]  ;;  %v56_v11 = vld [vmem:[#allocation2 + $0x48] sm:$0xff] }
  0x25   :  { %229 = vmatpush.msra.mxu3 %v115_v46  ;;  %201 = vmatpush.msra.mxu2 %v98_v48  ;;  %v51_v5 = vld [vmem:[#allocation2 + $0x20] sm:$0xff]  ;;  %v61_v12 = vld [vmem:[#allocation2 + $0x70] sm:$0xff]  ;;  %v62_v14 = vld [vmem:[#allocation2 + $0x78] sm:$0xff] }
  0x26   :  { %171 = vmatpush.msra.mxu1 %v83_v47  ;;  %143 = vmatpush.msra.mxu0 %v66_v49  ;;  %v55_v9 = vld [vmem:[#allocation2 + $0x40] sm:$0xff]  ;;  %v60_v15 = vld [vmem:[#allocation2 + $0x68] sm:$0xff] }
  0x27   :  { %230 = vmatpush.msra.mxu3 %v114_v50  ;;  %202 = vmatpush.msra.mxu2 %v97_v52  ;;  %v59_v13 = vld [vmem:[#allocation2 + $0x60] sm:$0xff] }
  0x28   :  { %172 = vmatpush.msra.mxu1 %v82_v51  ;;  %144 = vmatpush.msra.mxu0 %v65_v53  ;;  %v278_v16 = vld [vmem:[%s404_s2] ss:$0 sm:$0xff]  ;;  %s363_s2 = smov [#allocation7]  }
  0x29   :  { %231 = vmatpush.msra.mxu3 %v113_v54  ;;  %203 = vmatpush.msra.mxu2 %v96_v56  ;;  %s255_s26 = sshll.u32 %s363_s2, 4  ;;  %s256_s26 = int_to_ptr.vmem [resolvable:$true] %s255_s26 }
  0x2a   :  { %173 = vmatpush.msra.mxu1 %v81_v55  ;;  %145 = vmatpush.msra.mxu0 %v64_v57 }
  0x2b   :  { %232 = vmatpush.msra.mxu3 %v112_v58  ;;  %204 = vmatpush.msra.mxu2 %v95_v60 }
  0x2c   :  { %174 = vmatpush.msra.mxu1 %v80_v59  ;;  %146 = vmatpush.msra.mxu0 %v63_v61 }
  0x2d   :  { %205 = vmatmul.f32.vlgmr.msra.gmra.mxu2 %v49_v62  ;;  %233 = vmatpush.msra.mxu3 %v111_v63 }
  0x2e   :  { %147 = vmatmul.f32.vlgmr.msra.gmra.mxu0 %v47_v0  ;;  %234 = vmatmul.f32.vlgmr.msra.gmra.mxu3 %v50_v1 }
  0x2f   :  { %175 = vmatpush.msra.mxu1 %v79_v2 }
  0x30   :  { %176 = vmatmul.f32.vlgmr.msra.gmra.mxu1 %v48_v3 }
  0x35   :  { %208 = vmatmul.f32.gmra.mxu2 %v53_v4 }
  0x36   :  { %150 = vmatmul.f32.gmra.mxu0 %v51_v5  ;;  %237 = vmatmul.f32.gmra.mxu3 %v54_v6 }
  0x38   :  { %179 = vmatmul.f32.gmra.mxu1 %v52_v7 }
  0x3d   :  { %211 = vmatmul.f32.gmra.mxu2 %v57_v8 }
  0x3e   :  { %153 = vmatmul.f32.gmra.mxu0 %v55_v9  ;;  %240 = vmatmul.f32.gmra.mxu3 %v58_v10 }
  0x40   :  { %182 = vmatmul.f32.gmra.mxu1 %v56_v11 }
  0x45   :  { %214 = vmatmul.f32.gmra.mxu2 %v61_v12 }
  0x46   :  { %156 = vmatmul.f32.gmra.mxu0 %v59_v13  ;;  %243 = vmatmul.f32.gmra.mxu3 %v62_v14 }
  0x48   :  { %185 = vmatmul.f32.gmra.mxu1 %v60_v15 }
  0xab   :  { %v148_v17 = vpop.f32.mrf.mxu0 }
  0xac   :  { %v149_v18 = vadd.f32 %v278_v16, %v148_v17 }
  0xad   :  { %v177_v19 = vpop.f32.mrf.mxu1 }
  0xae   :  { %v178_v20 = vadd.f32 %v177_v19, %v149_v18 }
  0xb0   :  { %v206_v21 = vpop.f32.mrf.mxu2 }
  0xb1   :  { %v207_v22 = vadd.f32 %v206_v21, %v178_v20  ;;  %v235_v23 = vpop.f32.mrf.mxu3 }
  0xb3   :  { %v236_v24 = vadd.f32 %v235_v23, %v207_v22  ;;  %v151_v25 = vpop.f32.mrf.mxu0 }
  0xb4   :  { %v152_v26 = vadd.f32 %v278_v16, %v151_v25 }
  0xb5   :  { %247 = vst [vmem:[#allocation7] sm:$0xff] %v236_v24  ;;  %v180_v27 = vpop.f32.mrf.mxu1 }
  0xb6   :  { %v181_v28 = vadd.f32 %v180_v27, %v152_v26 }
  0xb8   :  { %v209_v29 = vpop.f32.mrf.mxu2 }
  0xb9   :  { %v210_v30 = vadd.f32 %v209_v29, %v181_v28  ;;  %v238_v31 = vpop.f32.mrf.mxu3 }
  0xbb   :  { %v239_v32 = vadd.f32 %v238_v31, %v210_v30  ;;  %v154_v33 = vpop.f32.mrf.mxu0 }
  0xbc   :  { %v155_v34 = vadd.f32 %v278_v16, %v154_v33 }
  0xbd   :  { %248 = vst [vmem:[#allocation7 + $0x8] sm:$0xff] %v239_v32  ;;  %v183_v35 = vpop.f32.mrf.mxu1 }
  0xbe   :  { %v184_v36 = vadd.f32 %v183_v35, %v155_v34 }
  0xc0   :  { %v212_v37 = vpop.f32.mrf.mxu2 }
  0xc1   :  { %v213_v38 = vadd.f32 %v212_v37, %v184_v36  ;;  %v241_v39 = vpop.f32.mrf.mxu3 }
  0xc3   :  { %v242_v40 = vadd.f32 %v241_v39, %v213_v38  ;;  %v157_v41 = vpop.f32.mrf.mxu0 }
  0xc4   :  { %v158_v42 = vadd.f32 %v278_v16, %v157_v41 }
  0xc5   :  { %249 = vst [vmem:[#allocation7 + $0x10] sm:$0xff] %v242_v40  ;;  %v186_v43 = vpop.f32.mrf.mxu1 }
  0xc6   :  { %v187_v44 = vadd.f32 %v186_v43, %v158_v42 }
  0xc8   :  { %v215_v45 = vpop.f32.mrf.mxu2 }
  0xc9   :  { %v216_v46 = vadd.f32 %v215_v45, %v187_v44  ;;  %v244_v47 = vpop.f32.mrf.mxu3 }
  0xcb   :  { %v245_v48 = vadd.f32 %v244_v47, %v216_v46 }
  0xcd   :  { %250 = vst [vmem:[#allocation7 + $0x18] sm:$0xff] %v245_v48 }
  0xce   :  { %263 = dma.vmem_to_hbm [thread:$0]  %s256_s26, 512, %s258_s29, [#allocation4], %s361_s24, %s361_s24, %s362_s25  }
  0xcf   :  { %355 = dma.done.wait [#allocation4], 512  }
  0xd0   :  { %356 = vsyncadd [#allocation4], 4294966784 }
  0xd1   :  { %268 = vsyncpa [#allocation3], 1 }
  0xd2   :  { %269 = vsyncpa [#allocation6], 1 }
  0xd3   :  { %270 = vsyncpa [#allocation4], 1 }

</bundles_post_ra>
